<compile_context>
chip_gen: v7x
topology: tpu7x:2x2x1
jax: 0.10.0
libtpu: 0.0.40
codegen_flags: <defaults>
</compile_context>

<pallas_src>
import jax
import jax.numpy as jnp
from jax.experimental import pallas as pl
from jax.experimental.pallas import tpu as pltpu

HIDDEN = 128


def policy_kernel(x_ref, w1t_ref, b1_ref, w2t_ref, b2_ref, wmu_ref, bmu_ref, out_ref):
    """Feature-major (batch-on-lanes) Policy forward for one batch tile.

    x_ref   : (2, T)    f32   inputs, batch on the 128-lane axis
    w1t_ref : (128, 2)  f32   affine1 weight, (out, in)
    b1_ref  : (128, 1)  f32
    w2t_ref : (128,128) bf16  affine2 weight, (out, in)
    b2_ref  : (128, 1)  f32
    wmu_ref : (128, 1)  f32   mu-head weight column
    bmu_ref : (1, 1)    f32
    out_ref : (2, T)    f32   row 0 = mu, row 1 = var
    """
    x0 = x_ref[0:1, :]                                   # (1, T)
    x1 = x_ref[1:2, :]                                   # (1, T)

    # Layer 1 (K=2) on the VPU: weight columns broadcast over lanes, input rows
    # broadcast over sublanes -> (128, T) f32 feature-major tile.
    h1 = w1t_ref[:, 0:1] * x0 + w1t_ref[:, 1:2] * x1 + b1_ref[...]
    h1 = jnp.maximum(h1, 0.0)

    # Layer 2 (128x128): MXU, bf16 operands, f32 accumulation, feature-major out.
    h2 = jnp.dot(w2t_ref[...], h1.astype(jnp.bfloat16),
                 preferred_element_type=jnp.float32) + b2_ref[...]
    base = jnp.maximum(h2, 0.0)                          # (128, T) f32

    # mu head (N=1): reduce over the feature (sublane) axis -> (1, T).
    z = jnp.sum(base * wmu_ref[...], axis=0, keepdims=True) + bmu_ref[...]

    # Separate lane-dense stores (no concatenate).
    out_ref[0:1, :] = jnp.tanh(z)
    # softplus(z) = log(1 + exp(z)), numerically stable form
    out_ref[1:2, :] = jnp.maximum(z, 0.0) + jnp.log1p(jnp.exp(-jnp.abs(z)))


def policy_forward(x, params, tile_b=4096):
    """x: (B, 2) f32.  Returns (mu, var), each (B, 1) f32."""
    w1, b1, w2, b2, wmu, bmu = params
    B = x.shape[0]

    # Batch onto the 128-lane axis: (B, 2) -> (2, B).
    x_t = x.T

    # tile_b: multiple of 128, capped so the grid has >= 2 steps whenever the
    # 128-padded batch allows it (otherwise one v7x TensorCore would idle).
    b_pad128 = pl.cdiv(B, 128) * 128
    tile_b = min(int(tile_b), max(128, b_pad128 // 2))
    tile_b = max(128, (tile_b // 128) * 128)
    B_pad = pl.cdiv(B, tile_b) * tile_b
    if B_pad != B:
        x_t = jnp.pad(x_t, ((0, 0), (0, B_pad - B)))
    grid = (B_pad // tile_b,)

    # Weight layouts for the feature-major kernel (prepared once in the wrapper).
    w1_t = w1.T                                    # (128, 2) f32
    b1_c = b1.reshape(HIDDEN, 1)                   # (128, 1) f32
    w2_t = w2.T.astype(jnp.bfloat16)               # (128, 128) bf16, (out, in)
    b2_c = b2.reshape(HIDDEN, 1)                   # (128, 1) f32
    wmu_c = wmu.reshape(HIDDEN, 1)                 # (128, 1) f32
    bmu_c = bmu.reshape(1, 1)                      # (1, 1)  f32

    const = lambda shape: pl.BlockSpec(shape, lambda i: (0, 0))

    # Scoped-VMEM limit sized to the working set (fits v5e default region through
    # v7x's 64 MiB/TC), with headroom for compiler temporaries.
    weight_bytes = (w1_t.size + b1_c.size + b2_c.size + wmu_c.size + 1) * 4 + w2_t.size * 2
    vmem_bytes = (4 * HIDDEN * tile_b * 4          # f32 feature-major intermediates
                  + HIDDEN * tile_b * 2            # bf16 h1 fed to the MXU
                  + 2 * 2 * (2 * tile_b * 4)       # double-buffered x / out tiles
                  + 2 * weight_bytes)              # double-buffered weights
    vmem_limit = int(min(max(2 * vmem_bytes, 16 << 20), 48 << 20))

    cost = pl.CostEstimate(
        flops=int(B_pad * (2 * 2 * HIDDEN + 2 * HIDDEN * HIDDEN + 2 * HIDDEN)),
        transcendentals=int(3 * B_pad),
        bytes_accessed=int(4 * B_pad * 4 + weight_bytes),
    )

    out = pl.pallas_call(
        policy_kernel,
        grid=grid,
        out_shape=jax.ShapeDtypeStruct((2, B_pad), jnp.float32),
        in_specs=[
            pl.BlockSpec((2, tile_b), lambda i: (0, i)),   # x^T      (2, B_pad)
            const(w1_t.shape),                             # W1^T     (128, 2)
            const(b1_c.shape),                             # b1       (128, 1)
            const(w2_t.shape),                             # W2^T     (128, 128) bf16
            const(b2_c.shape),                             # b2       (128, 1)
            const(wmu_c.shape),                            # Wmu      (128, 1)
            const(bmu_c.shape),                            # bmu      (1, 1)
        ],
        out_specs=pl.BlockSpec((2, tile_b), lambda i: (0, i)),
        compiler_params=pltpu.CompilerParams(
            dimension_semantics=("parallel",),             # megacore sharding on v7x
            vmem_limit_bytes=vmem_limit),
        cost_estimate=cost,
    )(x_t, w1_t, b1_c, w2_t, b2_c, wmu_c, bmu_c)

    mu = out[0:1, :B].T      # (B, 1)
    var = out[1:2, :B].T     # (B, 1)
    return mu, var


def init_params(key):
    # Deterministic synthetic init mimicking nn.Linear's U(-1/sqrt(fan_in), +1/sqrt(fan_in)).
    ks = jax.random.split(key, 6)

    def lin(kw, kb, fan_in, fan_out):
        bound = 1.0 / jnp.sqrt(jnp.float32(fan_in))
        w = jax.random.uniform(kw, (fan_in, fan_out), jnp.float32, -bound, bound)
        b = jax.random.uniform(kb, (1, fan_out), jnp.float32, -bound, bound)
        return w, b

    w1, b1 = lin(ks[0], ks[1], 2, HIDDEN)
    w2, b2 = lin(ks[2], ks[3], HIDDEN, HIDDEN)
    wmu, bmu = lin(ks[4], ks[5], HIDDEN, 1)
    # (self.var layer exists in __init__ but is never used in forward, so omitted here.)
    return (w1, b1, w2, b2, wmu, bmu)


def reference_forward(x, params):
    w1, b1, w2, b2, wmu, bmu = params
    h1 = jnp.maximum(x @ w1 + b1, 0.0)
    base = jnp.maximum(h1 @ w2 + b2, 0.0)
    z = base @ wmu + bmu
    return jnp.tanh(z), jax.nn.softplus(z)


if __name__ == "__main__":
    key = jax.random.PRNGKey(0)
    kx, kp = jax.random.split(key)
    B = 8
    x = jax.random.normal(kx, (B, 2), jnp.float32)
    params = init_params(kp)

    mu, var = policy_forward(x, params)
    mu = jax.block_until_ready(mu)
    var = jax.block_until_ready(var)

    mu_ref, var_ref = reference_forward(x, params)
    assert mu.shape == (B, 1) and var.shape == (B, 1)
    # bf16 operands on the 128x128 layer -> loosened tolerance vs. the f32 reference.
    assert jnp.allclose(mu, mu_ref, atol=3e-2, rtol=3e-2), (mu, mu_ref)
    assert jnp.allclose(var, var_ref, atol=3e-2, rtol=3e-2), (var, var_ref)

    print("KERNEL_OK")
</pallas_src>

<mosaic_0001>
module attributes {stable_mosaic.version = 11 : i64} {
  func.func @policy_kernel(%arg0: i32, %arg1: memref<2x128xf32, #tpu.memory_space<vmem>>, %arg2: memref<128x2xf32, #tpu.memory_space<vmem>>, %arg3: memref<128x1xf32, #tpu.memory_space<vmem>>, %arg4: memref<128x128xbf16, #tpu.memory_space<vmem>>, %arg5: memref<128x1xf32, #tpu.memory_space<vmem>>, %arg6: memref<128x1xf32, #tpu.memory_space<vmem>>, %arg7: memref<1x1xf32, #tpu.memory_space<vmem>>, %arg8: memref<2x128xf32, #tpu.memory_space<vmem>>) attributes {dimension_semantics = [#tpu.dimension_semantics<parallel>], iteration_bounds = array<i64: 1>, scalar_prefetch = 0 : i64, scratch_operands = 0 : i64, tpu.core_type = #tpu.core_type<tc>, window_params = [{transform_indices = @transform_0, window_bounds = array<i64: 2, 128>}, {pipeline_mode = #tpu.pipeline_mode<synchronous>, transform_indices = @transform_1, window_bounds = array<i64: 128, 2>}, {pipeline_mode = #tpu.pipeline_mode<synchronous>, transform_indices = @transform_2, window_bounds = array<i64: 128, 1>}, {pipeline_mode = #tpu.pipeline_mode<synchronous>, transform_indices = @transform_3, window_bounds = array<i64: 128, 128>}, {pipeline_mode = #tpu.pipeline_mode<synchronous>, transform_indices = @transform_4, window_bounds = array<i64: 128, 1>}, {pipeline_mode = #tpu.pipeline_mode<synchronous>, transform_indices = @transform_5, window_bounds = array<i64: 128, 1>}, {pipeline_mode = #tpu.pipeline_mode<synchronous>, transform_indices = @transform_6, window_bounds = array<i64: 1, 1>}, {transform_indices = @transform_7, window_bounds = array<i64: 2, 128>}]} {
    %c0 = arith.constant 0 : index
    %c0_0 = arith.constant 0 : index
    %0 = vector.load %arg1[%c0, %c0_0] : memref<2x128xf32, #tpu.memory_space<vmem>>, vector<1x128xf32>
    %c1 = arith.constant 1 : index
    %c0_1 = arith.constant 0 : index
    %1 = vector.load %arg1[%c1, %c0_1] : memref<2x128xf32, #tpu.memory_space<vmem>>, vector<1x128xf32>
    %c0_2 = arith.constant 0 : index
    %c0_3 = arith.constant 0 : index
    %2 = vector.load %arg2[%c0_2, %c0_3] : memref<128x2xf32, #tpu.memory_space<vmem>>, vector<128x1xf32>
    %3 = vector.broadcast %2 : vector<128x1xf32> to vector<128x128xf32>
    %4 = vector.broadcast %0 : vector<1x128xf32> to vector<128x128xf32>
    %5 = arith.mulf %3, %4 : vector<128x128xf32>
    %c0_4 = arith.constant 0 : index
    %c1_5 = arith.constant 1 : index
    %6 = vector.load %arg2[%c0_4, %c1_5] : memref<128x2xf32, #tpu.memory_space<vmem>>, vector<128x1xf32>
    %7 = vector.broadcast %6 : vector<128x1xf32> to vector<128x128xf32>
    %8 = vector.broadcast %1 : vector<1x128xf32> to vector<128x128xf32>
    %9 = arith.mulf %7, %8 : vector<128x128xf32>
    %10 = arith.addf %5, %9 : vector<128x128xf32>
    %c0_6 = arith.constant 0 : index
    %c0_7 = arith.constant 0 : index
    %11 = vector.load %arg3[%c0_6, %c0_7] : memref<128x1xf32, #tpu.memory_space<vmem>>, vector<128x1xf32>
    %12 = vector.broadcast %11 : vector<128x1xf32> to vector<128x128xf32>
    %13 = arith.addf %10, %12 : vector<128x128xf32>
    %cst = arith.constant 0.000000e+00 : f32
    %14 = vector.broadcast %cst : f32 to vector<128x128xf32>
    %15 = arith.maximumf %13, %14 : vector<128x128xf32>
    %c0_8 = arith.constant 0 : index
    %c0_9 = arith.constant 0 : index
    %16 = vector.load %arg4[%c0_8, %c0_9] : memref<128x128xbf16, #tpu.memory_space<vmem>>, vector<128x128xbf16>
    %17 = arith.truncf %15 : vector<128x128xf32> to vector<128x128xbf16>
    %cst_10 = arith.constant dense<0.000000e+00> : vector<128x128xf32>
    %18 = tpu.matmul %16, %17, %cst_10 {dimension_numbers = #tpu.dot_dimension_numbers<[1], [0], [0], [1], [0, 0, 1, 1], [], []>} : vector<128x128xbf16>, vector<128x128xbf16>, vector<128x128xf32> -> vector<128x128xf32>
    %c0_11 = arith.constant 0 : index
    %c0_12 = arith.constant 0 : index
    %19 = vector.load %arg5[%c0_11, %c0_12] : memref<128x1xf32, #tpu.memory_space<vmem>>, vector<128x1xf32>
    %20 = vector.broadcast %19 : vector<128x1xf32> to vector<128x128xf32>
    %21 = arith.addf %18, %20 : vector<128x128xf32>
    %cst_13 = arith.constant 0.000000e+00 : f32
    %22 = vector.broadcast %cst_13 : f32 to vector<128x128xf32>
    %23 = arith.maximumf %21, %22 : vector<128x128xf32>
    %c0_14 = arith.constant 0 : index
    %c0_15 = arith.constant 0 : index
    %24 = vector.load %arg6[%c0_14, %c0_15] : memref<128x1xf32, #tpu.memory_space<vmem>>, vector<128x1xf32>
    %25 = vector.broadcast %24 : vector<128x1xf32> to vector<128x128xf32>
    %26 = arith.mulf %23, %25 : vector<128x128xf32>
    %cst_16 = arith.constant dense<0.000000e+00> : vector<128xf32>
    %27 = vector.multi_reduction <add>, %26, %cst_16 [0] : vector<128x128xf32> to vector<128xf32>
    %28 = vector.shape_cast %27 : vector<128xf32> to vector<1x128xf32>
    %c0_17 = arith.constant 0 : index
    %c0_18 = arith.constant 0 : index
    %29 = vector.load %arg7[%c0_17, %c0_18] : memref<1x1xf32, #tpu.memory_space<vmem>>, vector<1x1xf32>
    %30 = vector.broadcast %29 : vector<1x1xf32> to vector<1x128xf32>
    %31 = arith.addf %28, %30 : vector<1x128xf32>
    %32 = math.tanh %31 : vector<1x128xf32>
    %c0_19 = arith.constant 0 : index
    %c0_20 = arith.constant 0 : index
    %33 = vector.load %arg8[%c0_19, %c0_20] : memref<2x128xf32, #tpu.memory_space<vmem>>, vector<1x128xf32>
    tpu.vector_store %arg8[%c0_19, %c0_20], %32 {strides = array<i32>} : memref<2x128xf32, #tpu.memory_space<vmem>>, vector<1x128xf32>,
    %cst_21 = arith.constant 0.000000e+00 : f32
    %34 = vector.broadcast %cst_21 : f32 to vector<1x128xf32>
    %35 = arith.maximumf %31, %34 : vector<1x128xf32>
    %36 = math.absf %31 : vector<1x128xf32>
    %cst_22 = arith.constant 0.000000e+00 : f32
    %37 = vector.broadcast %cst_22 : f32 to vector<1x128xf32>
    %38 = arith.subf %37, %36 : vector<1x128xf32>
    %39 = math.exp %38 : vector<1x128xf32>
    %40 = math.log1p %39 : vector<1x128xf32>
    %41 = arith.addf %35, %40 : vector<1x128xf32>
    %c1_23 = arith.constant 1 : index
    %c0_24 = arith.constant 0 : index
    %42 = vector.load %arg8[%c1_23, %c0_24] : memref<2x128xf32, #tpu.memory_space<vmem>>, vector<1x128xf32>
    tpu.vector_store %arg8[%c1_23, %c0_24], %41 {strides = array<i32>} : memref<2x128xf32, #tpu.memory_space<vmem>>, vector<1x128xf32>,
    return
  }
  func.func @transform_0(%arg0: i32) -> (i32, i32) {
    %c0_i32 = arith.constant 0 : i32
    %c0_i32_0 = arith.constant 0 : i32
    return %c0_i32, %arg0 : i32, i32
  }
  func.func @transform_1(%arg0: i32) -> (i32, i32) {
    %c0_i32 = arith.constant 0 : i32
    %c0_i32_0 = arith.constant 0 : i32
    %c0_i32_1 = arith.constant 0 : i32
    return %c0_i32, %c0_i32_0 : i32, i32
  }
  func.func @transform_2(%arg0: i32) -> (i32, i32) {
    %c0_i32 = arith.constant 0 : i32
    %c0_i32_0 = arith.constant 0 : i32
    %c0_i32_1 = arith.constant 0 : i32
    return %c0_i32, %c0_i32_0 : i32, i32
  }
  func.func @transform_3(%arg0: i32) -> (i32, i32) {
    %c0_i32 = arith.constant 0 : i32
    %c0_i32_0 = arith.constant 0 : i32
    %c0_i32_1 = arith.constant 0 : i32
    return %c0_i32, %c0_i32_0 : i32, i32
  }
  func.func @transform_4(%arg0: i32) -> (i32, i32) {
    %c0_i32 = arith.constant 0 : i32
    %c0_i32_0 = arith.constant 0 : i32
    %c0_i32_1 = arith.constant 0 : i32
    return %c0_i32, %c0_i32_0 : i32, i32
  }
  func.func @transform_5(%arg0: i32) -> (i32, i32) {
    %c0_i32 = arith.constant 0 : i32
    %c0_i32_0 = arith.constant 0 : i32
    %c0_i32_1 = arith.constant 0 : i32
    return %c0_i32, %c0_i32_0 : i32, i32
  }
  func.func @transform_6(%arg0: i32) -> (i32, i32) {
    %c0_i32 = arith.constant 0 : i32
    %c0_i32_0 = arith.constant 0 : i32
    %c0_i32_1 = arith.constant 0 : i32
    return %c0_i32, %c0_i32_0 : i32, i32
  }
  func.func @transform_7(%arg0: i32) -> (i32, i32) {
    %c0_i32 = arith.constant 0 : i32
    %c0_i32_0 = arith.constant 0 : i32
    return %c0_i32, %arg0 : i32, i32
  }
}

</mosaic_0001>

<bundles_post_ra>
// kernel: tpu_custom_call.1
= control target key start
LH: loop header
LB: loop body
LE: loop exit
PB: predicated region body
PF: predicated region fallthrough
CT: control target
= control target key end

     0   :  { %s1329_s0 = inlined_call_operand.vmem [shape: f32[2,128], index: 0, kind: input, shape index: {}]   ;;  %s1330_s1 = inlined_call_operand.vmem [shape: f32[128,2], index: 1, kind: input, shape index: {}]   ;;  %s1331_s2 = inlined_call_operand.vmem [shape: f32[128,1], index: 2, kind: input, shape index: {}]   ;;  %s1332_s3 = inlined_call_operand.vmem [shape: bf16[128,128], index: 3, kind: input, shape index: {}]   ;;  %s1333_s4 = inlined_call_operand.vmem [shape: f32[128,1], index: 4, kind: input, shape index: {}]   ;;  %s1334_s5 = inlined_call_operand.vmem [shape: f32[128,1], index: 5, kind: input, shape index: {}]   ;;  %s1335_s6 = inlined_call_operand.<no memory space> [shape: f32[1,1], index: 6, kind: input, shape index: {}]   ;;  %s1336_s7 = inlined_call_operand.hbm [shape: f32[2,128], index: 7, kind: output, shape index: {}]  }
   0x1   :  { %v12_v0 = vstv %s1335_s6 }
   0x2   :  { %13 = vst [vmem:[#allocation2] sm:$0x1] %v12_v0 }
   0x3   :  { %v34_v1 = vld [vmem:[%s1330_s1 + $0x10] sm:$0xff]  ;;  %v32_v2 = vld [vmem:[%s1330_s1] sm:$0xff]  ;;  %v966_v3 = vmov 1   ;;  %v33_v5 = vld [vmem:[%s1330_s1 + $0x8] sm:$0xff]  ;;  %v967_v8 = vmov 0  }
   0x4   :  { %912 = vset.pattern.permute.xlu0 %v966_v3  ;;  %910 = vset.pattern.permute.xlu1 %v966_v3  ;;  %v36_v4 = vld [vmem:[%s1330_s1 + $0x20] sm:$0xff]  ;;  %v38_v6 = vld [vmem:[%s1330_s1 + $0x30] sm:$0xff]  ;;  %v35_v7 = vld [vmem:[%s1330_s1 + $0x18] sm:$0xff] }
   0x5   :  { %157 = vperm.xlu0 %912, %v34_v1   ;;  %149 = vperm.xlu1 %910, %v32_v2   ;;  %v40_v9 = vld [vmem:[%s1330_s1 + $0x40] sm:$0xff]  ;;  %v42_v10 = vld [vmem:[%s1330_s1 + $0x50] sm:$0xff] }
   0x6   :  { %v248_v11 = vld [vmem:[%s1331_s2] sm:$0xff]  ;;  %v1053_v13 = vld [vmem:[%s1330_s1 + $0x70] sm:$0xff] }
   0x7   :  { %v1046_v12 = vld [vmem:[%s1330_s1 + $0x60] sm:$0xff] }
   0x9   :  { %165 = vperm.xlu0 %912, %v36_v4   ;;  %153 = vperm.xlu1 %910, %v33_v5  }
   0xd   :  { %173 = vperm.xlu0 %912, %v38_v6   ;;  %911 = vset.pattern.permute.xlu1 %v967_v8 }
   0xe   :  { %65 = vperm.xlu1 %911, %v35_v7  }
  0x11   :  { %181 = vperm.xlu0 %912, %v40_v9  }
  0x12   :  { %913 = vset.pattern.permute.xlu1 %v966_v3 }
  0x13   :  { %161 = vperm.xlu1 %913, %v35_v7  }
  0x15   :  { %189 = vperm.xlu0 %912, %v42_v10  }
  0x17   :  { %914 = vset.pattern.permute.xlu1 %v967_v8 }
  0x18   :  { %266 = vperm.xlu1 %914, %v248_v11  }
  0x19   :  { %197 = vperm.xlu0 %912, %v1046_v12  }
  0x1a   :  { %14 = vsyncpa [#allocation4], 0  ;;  %v37_v14 = vld [vmem:[%s1330_s1 + $0x28] sm:$0xff]  ;;  %v250_v15 = vld [vmem:[%s1331_s2 + $0x10] sm:$0xff] }
  0x1b   :  { %v249_v16 = vld [vmem:[%s1331_s2 + $0x8] sm:$0xff]  ;;  %v251_v17 = vld [vmem:[%s1331_s2 + $0x18] sm:$0xff]  ;;  %v252_v21 = vld [vmem:[%s1331_s2 + $0x20] sm:$0xff] }
  0x1c   :  { %70 = vperm.xlu1 %914, %v36_v4   ;;  %v39_v18 = vld [vmem:[%s1330_s1 + $0x38] sm:$0xff]  ;;  %v253_v19 = vld [vmem:[%s1331_s2 + $0x28] sm:$0xff]  ;;  %v400_v26 = vld [vmem:[%s1333_s4] sm:$0xff] }
  0x1d   :  { %205 = vperm.xlu0 %912, %v1053_v13   ;;  %v255_v20 = vld [vmem:[%s1331_s2 + $0x38] sm:$0xff]  ;;  %v257_v22 = vld [vmem:[%s1331_s2 + $0x48] sm:$0xff]  ;;  %v402_v27 = vld [vmem:[%s1333_s4 + $0x10] sm:$0xff] }
  0x1e   :  { %v259_v23 = vld [vmem:[%s1331_s2 + $0x58] sm:$0xff]  ;;  %v41_v24 = vld [vmem:[%s1330_s1 + $0x48] sm:$0xff]  ;;  %v254_v28 = vld [vmem:[%s1331_s2 + $0x30] sm:$0xff] }
  0x1f   :  { %v261_v25 = vld [vmem:[%s1331_s2 + $0x68] sm:$0xff]  ;;  %v657_v29 = vld [vmem:[%s1334_s5] sm:$0xff]  ;;  %v43_v31 = vld [vmem:[%s1330_s1 + $0x58] sm:$0xff] }
  0x20   :  { %75 = vperm.xlu1 %914, %v37_v14   ;;  %v404_v30 = vld [vmem:[%s1333_s4 + $0x20] sm:$0xff]  ;;  %v405_v32 = vld [vmem:[%s1333_s4 + $0x28] sm:$0xff]  ;;  %v406_v33 = vld [vmem:[%s1333_s4 + $0x30] sm:$0xff] }
  0x21   :  { %925 = vset.pattern.permute.xlu0 %v967_v8  ;;  %v256_v34 = vld [vmem:[%s1331_s2 + $0x40] sm:$0xff]  ;;  %v407_v35 = vld [vmem:[%s1333_s4 + $0x38] sm:$0xff]  ;;  %v45_v37 = vld [vmem:[%s1330_s1 + $0x68] sm:$0xff] }
  0x22   :  { %50 = vperm.xlu0 %925, %v32_v2   ;;  %v408_v36 = vld [vmem:[%s1333_s4 + $0x40] sm:$0xff]  ;;  %v409_v38 = vld [vmem:[%s1333_s4 + $0x48] sm:$0xff]  ;;  %v410_v39 = vld [vmem:[%s1333_s4 + $0x50] sm:$0xff] }
  0x23   :  { %v411_v40 = vld [vmem:[%s1333_s4 + $0x58] sm:$0xff]  ;;  %v258_v41 = vld [vmem:[%s1331_s2 + $0x50] sm:$0xff]  ;;  %v412_v42 = vld [vmem:[%s1333_s4 + $0x60] sm:$0xff] }
  0x24   :  { %915 = vset.pattern.permute.xlu1 %v966_v3  ;;  %v413_v43 = vld [vmem:[%s1333_s4 + $0x68] sm:$0xff]  ;;  %v47_v44 = vld [vmem:[%s1330_s1 + $0x78] sm:$0xff]  ;;  %v414_v45 = vld [vmem:[%s1333_s4 + $0x70] sm:$0xff] }
  0x25   :  { %169 = vperm.xlu1 %915, %v37_v14   ;;  %v415_v46 = vld [vmem:[%s1333_s4 + $0x78] sm:$0xff]  ;;  %v260_v47 = vld [vmem:[%s1331_s2 + $0x60] sm:$0xff]  ;;  %v671_v48 = vld [vmem:[%s1334_s5 + $0x70] sm:$0xff] }
  0x26   :  { %55 = vperm.xlu0 %925, %v33_v5   ;;  %v262_v51 = vld [vmem:[%s1331_s2 + $0x70] sm:$0xff]  ;;  %v790_v52 = vld [vmem:[#allocation2] sm:$0x1]  ;;  %v263_v55 = vld [vmem:[%s1331_s2 + $0x78] sm:$0xff] }
  0x27   :  { %v401_v58 = vld [vmem:[%s1333_s4 + $0x8] sm:$0xff]  ;;  %v403_v60 = vld [vmem:[%s1333_s4 + $0x18] sm:$0xff]  ;;  %v928_v62 = vld [vmem:[%s1332_s3] sm:$0xff]  }
  0x28   :  { %v929_v63 = vld [vmem:[%s1332_s3 + $0x20] sm:$0xff]   ;;  %875 = vmatprep.mubr.bf16.mxu0 %v928_v62  ;;  %v659_v4 = vld [vmem:[%s1334_s5 + $0x10] sm:$0xff]  ;;  %v660_v7 = vld [vmem:[%s1334_s5 + $0x18] sm:$0xff] }
  0x29   :  { %916 = vset.pattern.permute.xlu1 %v967_v8  ;;  %883 = vmatprep.mubr.bf16.mxu1 %v929_v63  ;;  %v1221_v11 = vld [vmem:[%s1329_s0 + $0x1] ss:$0 sm:$0xff]  ;;  %v668_v62 = vld [vmem:[%s1334_s5 + $0x58] sm:$0xff] }
  0x2a   :  { %60 = vperm.xlu0 %925, %v34_v1   ;;  %276 = vperm.xlu1 %916, %v250_v15   ;;  %v658_v1 = vld [vmem:[%s1334_s5 + $0x8] sm:$0xff] }
  0x2e   :  { %271 = vperm.xlu0 %925, %v249_v16   ;;  %80 = vperm.xlu1 %916, %v38_v6   ;;  %v662_v16 = vld [vmem:[%s1334_s5 + $0x28] sm:$0xff] }
  0x32   :  { %281 = vperm.xlu0 %925, %v251_v17   ;;  %85 = vperm.xlu1 %916, %v39_v18  }
  0x36   :  { %291 = vperm.xlu0 %925, %v253_v19   ;;  %917 = vset.pattern.permute.xlu1 %v966_v3 }
  0x37   :  { %177 = vperm.xlu1 %917, %v39_v18  }
  0x3a   :  { %301 = vperm.xlu0 %925, %v255_v20  }
  0x3b   :  { %918 = vset.pattern.permute.xlu1 %v967_v8 }
  0x3c   :  { %286 = vperm.xlu1 %918, %v252_v21  }
  0x3e   :  { %311 = vperm.xlu0 %925, %v257_v22  }
  0x40   :  { %90 = vperm.xlu1 %918, %v40_v9  }
  0x42   :  { %321 = vperm.xlu0 %925, %v259_v23   ;;  %v663_v23 = vld [vmem:[%s1334_s5 + $0x30] sm:$0xff] }
  0x44   :  { %95 = vperm.xlu1 %918, %v41_v24  }
  0x46   :  { %331 = vperm.xlu0 %925, %v261_v25  }
  0x48   :  { %919 = vset.pattern.permute.xlu1 %v966_v3 }
  0x49   :  { %185 = vperm.xlu1 %919, %v41_v24  }
  0x4a   :  { %418 = vperm.xlu0 %925, %v400_v26  }
  0x4d   :  { %920 = vset.pattern.permute.xlu1 %v967_v8 }
  0x4e   :  { %428 = vperm.xlu0 %925, %v402_v27   ;;  %296 = vperm.xlu1 %920, %v254_v28  }
  0x52   :  { %675 = vperm.xlu0 %925, %v657_v29   ;;  %100 = vperm.xlu1 %920, %v42_v10   ;;  %v661_v10 = vld [vmem:[%s1334_s5 + $0x20] sm:$0xff] }
  0x56   :  { %438 = vperm.xlu0 %925, %v404_v30   ;;  %105 = vperm.xlu1 %920, %v43_v31  }
  0x5a   :  { %443 = vperm.xlu0 %925, %v405_v32   ;;  %921 = vset.pattern.permute.xlu1 %v966_v3  ;;  %v664_v32 = vld [vmem:[%s1334_s5 + $0x38] sm:$0xff] }
  0x5b   :  { %193 = vperm.xlu1 %921, %v43_v31  }
  0x5e   :  { %448 = vperm.xlu0 %925, %v406_v33  }
  0x5f   :  { %922 = vset.pattern.permute.xlu1 %v967_v8 }
  0x60   :  { %306 = vperm.xlu1 %922, %v256_v34  }
  0x62   :  { %453 = vperm.xlu0 %925, %v407_v35  }
  0x64   :  { %110 = vperm.xlu1 %922, %v1046_v12   ;;  %v1226_v12 = vld [vmem:[%s1329_s0] ss:$0 sm:$0xff] }
  0x66   :  { %458 = vperm.xlu0 %925, %v408_v36  }
  0x68   :  { %115 = vperm.xlu1 %922, %v45_v37  }
  0x6a   :  { %463 = vperm.xlu0 %925, %v409_v38  }
  0x6c   :  { %923 = vset.pattern.permute.xlu1 %v966_v3 }
  0x6d   :  { %201 = vperm.xlu1 %923, %v45_v37  }
  0x6e   :  { %468 = vperm.xlu0 %925, %v410_v39  }
  0x71   :  { %924 = vset.pattern.permute.xlu1 %v967_v8 }
  0x72   :  { %473 = vperm.xlu0 %925, %v411_v40   ;;  %316 = vperm.xlu1 %924, %v258_v41   ;;  %v665_v41 = vld [vmem:[%s1334_s5 + $0x40] sm:$0xff] }
  0x76   :  { %478 = vperm.xlu0 %925, %v412_v42   ;;  %120 = vperm.xlu1 %924, %v1053_v13  }
  0x7a   :  { %483 = vperm.xlu0 %925, %v413_v43   ;;  %125 = vperm.xlu1 %924, %v47_v44  }
  0x7e   :  { %488 = vperm.xlu0 %925, %v414_v45   ;;  %926 = vset.pattern.permute.xlu1 %v966_v3 }
  0x7f   :  { %209 = vperm.xlu1 %926, %v47_v44  }
  0x82   :  { %493 = vperm.xlu0 %925, %v415_v46  }
  0x83   :  { %927 = vset.pattern.permute.xlu1 %v967_v8 }
  0x84   :  { %326 = vperm.xlu1 %927, %v260_v47   ;;  %v150_v49 = vpop.permute.xlu1 %149  ;;  %v158_v50 = vpop.permute.xlu0 %157  ;;  %v666_v47 = vld [vmem:[%s1334_s5 + $0x48] sm:$0xff] }
  0x85   :  { %v216_v17 = vmul.f32 %v1221_v11, %v150_v49  ;;  %v218_v18 = vmul.f32 %v1221_v11, %v158_v50 }
  0x86   :  { %745 = vperm.xlu0 %925, %v671_v48  }
  0x88   :  { %336 = vperm.xlu1 %927, %v262_v51   ;;  %v154_v53 = vpop.permute.xlu1 %153  ;;  %v1179_v54 = vpop.permute.xlu0 %165 }
  0x89   :  { %v217_v24 = vmul.f32 %v1221_v11, %v154_v53  ;;  %v220_v48 = vmul.f32 %v1221_v11, %v1179_v54 }
  0x8a   :  { %793 = vperm.xlu0 %925, %v790_v52  }
  0x8c   :  { %341 = vperm.xlu1 %927, %v263_v55   ;;  %v1184_v56 = vpop.permute.xlu0 %173 }
  0x8d   :  { %v66_v57 = vpop.permute.xlu1 %65 }
  0x8e   :  { %v135_v33 = vmul.f32 %v1226_v12, %v66_v57  ;;  %v667_v57 = vld [vmem:[%s1334_s5 + $0x50] sm:$0xff] }
  0x90   :  { %423 = vperm.xlu1 %927, %v401_v58   ;;  %v1189_v59 = vpop.permute.xlu0 %181 }
  0x92   :  { %v162_v61 = vpop.permute.xlu1 %161 }
  0x93   :  { %v219_v26 = vmul.f32 %v1221_v11, %v162_v61 }
  0x94   :  { %433 = vperm.xlu1 %927, %v403_v60   ;;  %v1200_v0 = vpop.permute.xlu0 %189 }
  0x95   :  { %v235_v38 = vadd.f32 %v219_v26, %v135_v33 }
  0x97   :  { %v267_v2 = vpop.permute.xlu1 %266 }
  0x98   :  { %680 = vperm.xlu1 %927, %v658_v1   ;;  %v1205_v3 = vpop.permute.xlu0 %197 }
  0x9b   :  { %v71_v5 = vpop.permute.xlu1 %70 }
  0x9c   :  { %685 = vperm.xlu1 %927, %v659_v4   ;;  %v1210_v6 = vpop.permute.xlu0 %205  ;;  %v136_v49 = vmul.f32 %v1226_v12, %v71_v5  ;;  %v669_v5 = vld [vmem:[%s1334_s5 + $0x60] sm:$0xff] }
  0x9e   :  { %v236_v54 = vadd.f32 %v220_v48, %v136_v49 }
  0x9f   :  { %v76_v8 = vpop.permute.xlu1 %75 }
  0xa0   :  { %690 = vperm.xlu1 %927, %v660_v7   ;;  %v137_v50 = vmul.f32 %v1226_v12, %v76_v8 }
  0xa1   :  { %v51_v9 = vpop.permute.xlu0 %50 }
  0xa2   :  { %v132_v13 = vmul.f32 %v1226_v12, %v51_v9  ;;  %v670_v9 = vld [vmem:[%s1334_s5 + $0x68] sm:$0xff] }
  0xa4   :  { %695 = vperm.xlu1 %927, %v661_v10   ;;  %v170_v14 = vpop.permute.xlu1 %169  ;;  %v232_v19 = vadd.f32 %v216_v17, %v132_v13  ;;  %v222_v13 = vmul.f32 %v1221_v11, %v1184_v56 }
  0xa5   :  { %v56_v15 = vpop.permute.xlu0 %55  ;;  %v221_v44 = vmul.f32 %v1221_v11, %v170_v14 }
  0xa6   :  { %v133_v20 = vmul.f32 %v1226_v12, %v56_v15  ;;  %v344_v27 = vadd.f32 %v267_v2, %v232_v19 }
  0xa7   :  { %v237_v55 = vadd.f32 %v221_v44, %v137_v50 }
  0xa8   :  { %700 = vperm.xlu1 %927, %v662_v16   ;;  %v233_v29 = vadd.f32 %v217_v24, %v133_v20  ;;  %v360_v36 = vmax.f32 %v344_v27, 0.0 }
  0xa9   :  { %v61_v21 = vpop.permute.xlu0 %60  ;;  %v277_v22 = vpop.permute.xlu1 %276 }
  0xaa   :  { %v134_v25 = vmul.f32 %v1226_v12, %v61_v21 }
  0xac   :  { %v234_v28 = vadd.f32 %v218_v18, %v134_v25  ;;  %705 = vperm.xlu1 %927, %v663_v23   ;;  %v672_v18 = vld [vmem:[%s1334_s5 + $0x78] sm:$0xff] }
  0xad   :  { %v272_v30 = vpop.permute.xlu0 %271  ;;  %v81_v31 = vpop.permute.xlu1 %80 }
  0xae   :  { %v345_v34 = vadd.f32 %v272_v30, %v233_v29  ;;  %v346_v35 = vadd.f32 %v277_v22, %v234_v28  ;;  %v138_v14 = vmul.f32 %v1226_v12, %v81_v31  ;;  %v224_v29 = vmul.f32 %v1221_v11, %v1189_v59 }
  0xb0   :  { %v361_v37 = vmax.f32 %v345_v34, 0.0  ;;  %710 = vperm.xlu1 %927, %v664_v32   ;;  %v362_v45 = vmax.f32 %v346_v35, 0.0  ;;  %v238_v20 = vadd.f32 %v222_v13, %v138_v14 }
  0xb1   :  { %v282_v39 = vpop.permute.xlu0 %281  ;;  %v86_v40 = vpop.permute.xlu1 %85 }
  0xb2   :  { %v392_v42 = vpack.c.bf16 %v361_v37, %v360_v36  ;;  %v347_v43 = vadd.f32 %v282_v39, %v235_v38  ;;  %v139_v10 = vmul.f32 %v1226_v12, %v86_v40 }
  0xb4   :  { %v363_v46 = vmax.f32 %v347_v43, 0.0  ;;  %715 = vperm.xlu1 %927, %v665_v41   ;;  %859 = vmatprep.subr.bf16.mxu0 %v392_v42 }
  0xb5   :  { %891 = vmatprep.subr.bf16.mxu1 %v392_v42  ;;  %860 = vmatpush3.bf16.msra.mxu0 %v392_v42  ;;  %v292_v53 = vpop.permute.xlu0 %291 }
  0xb6   :  { %v393_v51 = vpack.c.bf16 %v363_v46, %v362_v45  ;;  %899 = vmatpush3.bf16.msra.mxu1 %v392_v42  ;;  %v178_v52 = vpop.permute.xlu1 %177  ;;  %v349_v58 = vadd.f32 %v292_v53, %v237_v55 }
  0xb7   :  { %v223_v8 = vmul.f32 %v1221_v11, %v178_v52 }
  0xb8   :  { %720 = vperm.xlu1 %927, %v666_v47   ;;  %861 = vmatprep.subr.bf16.mxu0 %v393_v51  ;;  %v365_v63 = vmax.f32 %v349_v58, 0.0  ;;  %v226_v47 = vmul.f32 %v1221_v11, %v1200_v0 }
  0xb9   :  { %892 = vmatprep.subr.bf16.mxu1 %v393_v51  ;;  %862 = vmatpush3.bf16.msra.mxu0 %v393_v51  ;;  %v239_v15 = vadd.f32 %v223_v8, %v139_v10  ;;  %v302_v17 = vpop.permute.xlu0 %301  ;;  %v230_v10 = vmul.f32 %v1221_v11, %v1210_v6 }
  0xba   :  { %900 = vmatpush3.bf16.msra.mxu1 %v393_v51 }
  0xbb   :  { %v287_v60 = vpop.permute.xlu1 %286  ;;  %v351_v19 = vadd.f32 %v302_v17, %v239_v15 }
  0xbc   :  { %v348_v61 = vadd.f32 %v287_v60, %v236_v54  ;;  %725 = vperm.xlu1 %927, %v667_v57  }
  0xbd   :  { %v367_v23 = vmax.f32 %v351_v19, 0.0  ;;  %v312_v33 = vpop.permute.xlu0 %311 }
  0xbe   :  { %v364_v1 = vmax.f32 %v348_v61, 0.0 }
  0xbf   :  { %v91_v2 = vpop.permute.xlu1 %90 }
  0xc0   :  { %v394_v4 = vpack.c.bf16 %v365_v63, %v364_v1  ;;  %730 = vperm.xlu1 %927, %v668_v62   ;;  %v140_v30 = vmul.f32 %v1226_v12, %v91_v2  ;;  %v228_v1 = vmul.f32 %v1221_v11, %v1205_v3 }
  0xc1   :  { %v322_v48 = vpop.permute.xlu0 %321 }
  0xc2   :  { %863 = vmatprep.subr.bf16.mxu0 %v394_v4  ;;  %893 = vmatprep.subr.bf16.mxu1 %v394_v4  ;;  %v240_v35 = vadd.f32 %v224_v29, %v140_v30 }
  0xc3   :  { %v96_v7 = vpop.permute.xlu1 %95  ;;  %864 = vmatpush3.bf16.msra.mxu0 %v394_v4  ;;  %901 = vmatpush3.bf16.msra.mxu1 %v394_v4 }
  0xc4   :  { %735 = vperm.xlu1 %927, %v669_v5   ;;  %v141_v28 = vmul.f32 %v1226_v12, %v96_v7 }
  0xc5   :  { %v332_v2 = vpop.permute.xlu0 %331 }
  0xc8   :  { %740 = vperm.xlu1 %927, %v670_v9   ;;  %v186_v16 = vpop.permute.xlu1 %185 }
  0xc9   :  { %v225_v27 = vmul.f32 %v1221_v11, %v186_v16 }
  0xcb   :  { %v241_v31 = vadd.f32 %v225_v27, %v141_v28  ;;  %v935_v27 = vld [vmem:[%s1332_s3 + $0x38] sm:$0xff]   ;;  %v419_v28 = vpop.permute.xlu0 %418 }
  0xcc   :  { %750 = vperm.xlu1 %927, %v672_v18  }
  0xcd   :  { %v297_v21 = vpop.permute.xlu1 %296  ;;  %v353_v34 = vadd.f32 %v312_v33, %v241_v31 }
  0xce   :  { %v350_v22 = vadd.f32 %v297_v21, %v238_v20 }
  0xcf   :  { %v369_v39 = vmax.f32 %v353_v34, 0.0  ;;  %v429_v30 = vpop.permute.xlu0 %428 }
  0xd0   :  { %v366_v24 = vmax.f32 %v350_v22, 0.0 }
  0xd1   :  { %v101_v25 = vpop.permute.xlu1 %100 }
  0xd2   :  { %v395_v26 = vpack.c.bf16 %v367_v23, %v366_v24  ;;  %v142_v44 = vmul.f32 %v1226_v12, %v101_v25  ;;  %v932_v25 = vld [vmem:[%s1332_s3 + $0x10] sm:$0xff]  }
  0xd4   :  { %865 = vmatprep.subr.bf16.mxu0 %v395_v26  ;;  %894 = vmatprep.subr.bf16.mxu1 %v395_v26  ;;  %v242_v50 = vadd.f32 %v226_v47, %v142_v44 }
  0xd5   :  { %v106_v56 = vpop.permute.xlu1 %105  ;;  %866 = vmatpush3.bf16.msra.mxu0 %v395_v26  ;;  %902 = vmatpush3.bf16.msra.mxu1 %v395_v26  ;;  %v933_v26 = vld [vmem:[%s1332_s3 + $0x30] sm:$0xff]  }
  0xd6   :  { %v143_v43 = vmul.f32 %v1226_v12, %v106_v56  ;;  %v934_v56 = vld [vmem:[%s1332_s3 + $0x18] sm:$0xff]  }
  0xda   :  { %v194_v32 = vpop.permute.xlu1 %193 }
  0xdb   :  { %v227_v59 = vmul.f32 %v1221_v11, %v194_v32  ;;  %v676_v32 = vpop.permute.xlu0 %675 }
  0xdd   :  { %v243_v45 = vadd.f32 %v227_v59, %v143_v43 }
  0xdf   :  { %v307_v36 = vpop.permute.xlu1 %306  ;;  %v355_v49 = vadd.f32 %v322_v48, %v243_v45  ;;  %v439_v34 = vpop.permute.xlu0 %438 }
  0xe0   :  { %v352_v37 = vadd.f32 %v307_v36, %v240_v35 }
  0xe1   :  { %v371_v55 = vmax.f32 %v355_v49, 0.0 }
  0xe2   :  { %v368_v38 = vmax.f32 %v352_v37, 0.0 }
  0xe3   :  { %v111_v40 = vpop.permute.xlu1 %110  ;;  %v444_v36 = vpop.permute.xlu0 %443 }
  0xe4   :  { %v396_v41 = vpack.c.bf16 %v369_v39, %v368_v38  ;;  %v144_v0 = vmul.f32 %v1226_v12, %v111_v40 }
  0xe6   :  { %867 = vmatprep.subr.bf16.mxu0 %v396_v41  ;;  %895 = vmatprep.subr.bf16.mxu1 %v396_v41  ;;  %v244_v5 = vadd.f32 %v228_v1, %v144_v0 }
  0xe7   :  { %v116_v42 = vpop.permute.xlu1 %115  ;;  %868 = vmatpush3.bf16.msra.mxu0 %v396_v41  ;;  %903 = vmatpush3.bf16.msra.mxu1 %v396_v41  ;;  %v449_v38 = vpop.permute.xlu0 %448 }
  0xe8   :  { %v145_v61 = vmul.f32 %v1226_v12, %v116_v42 }
  0xeb   :  { %v454_v40 = vpop.permute.xlu0 %453 }
  0xec   :  { %v202_v46 = vpop.permute.xlu1 %201 }
  0xed   :  { %v229_v60 = vmul.f32 %v1221_v11, %v202_v46 }
  0xef   :  { %v245_v62 = vadd.f32 %v229_v60, %v145_v61  ;;  %v459_v42 = vpop.permute.xlu0 %458 }
  0xf1   :  { %v317_v51 = vpop.permute.xlu1 %316  ;;  %v357_v4 = vadd.f32 %v332_v2, %v245_v62 }
  0xf2   :  { %v354_v52 = vadd.f32 %v317_v51, %v242_v50 }
  0xf3   :  { %v373_v15 = vmax.f32 %v357_v4, 0.0  ;;  %v464_v43 = vpop.permute.xlu0 %463 }
  0xf4   :  { %v370_v53 = vmax.f32 %v354_v52, 0.0 }
  0xf5   :  { %v121_v57 = vpop.permute.xlu1 %120 }
  0xf6   :  { %v397_v58 = vpack.c.bf16 %v371_v55, %v370_v53  ;;  %v146_v8 = vmul.f32 %v1226_v12, %v121_v57 }
  0xf7   :  { %v469_v45 = vpop.permute.xlu0 %468 }
  0xf8   :  { %869 = vmatprep.subr.bf16.mxu0 %v397_v58  ;;  %896 = vmatprep.subr.bf16.mxu1 %v397_v58  ;;  %v246_v19 = vadd.f32 %v230_v10, %v146_v8 }
  0xf9   :  { %v126_v54 = vpop.permute.xlu1 %125  ;;  %870 = vmatpush3.bf16.msra.mxu0 %v397_v58  ;;  %904 = vmatpush3.bf16.msra.mxu1 %v397_v58 }
  0xfa   :  { %v147_v17 = vmul.f32 %v1226_v12, %v126_v54  ;;  %v931_v12 = vld [vmem:[%s1332_s3 + $0x28] sm:$0xff]  }
  0xfb   :  { %v474_v47 = vpop.permute.xlu0 %473 }
  0xfe   :  { %v210_v63 = vpop.permute.xlu1 %209 }
  0xff   :  { %v231_v13 = vmul.f32 %v1221_v11, %v210_v63  ;;  %v930_v11 = vld [vmem:[%s1332_s3 + $0x8] sm:$0xff]   ;;  %v479_v2 = vpop.permute.xlu0 %478  ;;  %s968_s3 = smov [#allocation3]  }
 0x100   :  { %s825_s20 = sshll.u32 %s968_s3, 4  ;;  %s826_s20 = int_to_ptr.vmem [resolvable:$true] %s825_s20 }
 0x101   :  { %v247_v20 = vadd.f32 %v231_v13, %v147_v17  ;;  %s942_s21 = scalar_lea.vmem %s826_s20, 32  ;;  %p947_p1 = scmp.lt.s32.totalorder %s826_s20, %s826_s20 }
 0x102   :  { %p943_p0 = scmp.ne.s32.totalorder %s826_s20, %s942_s21  ;;  %p948_p2 = scmp.lt.s32.totalorder %s942_s21, %s942_s21 }
 0x103   :  { %v327_v7 = vpop.permute.xlu1 %326 }
 0x104   :  { %v356_v9 = vadd.f32 %v327_v7, %v244_v5  ;;  %p949_p3 = por %p948_p2, %p947_p1 }
 0x106   :  { %v372_v14 = vmax.f32 %v356_v9, 0.0  ;;  %p950_p4 = pnand %p949_p3, %p943_p0 }
 0x107   :  { %v337_v16 = vpop.permute.xlu1 %336 }
 0x108   :  { %v398_v18 = vpack.c.bf16 %v373_v15, %v372_v14  ;;  %v358_v3 = vadd.f32 %v337_v16, %v246_v19 }
 0x10a   :  { %871 = vmatprep.subr.bf16.mxu0 %v398_v18  ;;  %897 = vmatprep.subr.bf16.mxu1 %v398_v18  ;;  %v374_v23 = vmax.f32 %v358_v3, 0.0 }
 0x10b   :  { %v342_v21 = vpop.permute.xlu1 %341  ;;  %872 = vmatpush3.bf16.msra.mxu0 %v398_v18  ;;  %905 = vmatpush3.bf16.msra.mxu1 %v398_v18 }
 0x10c   :  { %v359_v22 = vadd.f32 %v342_v21, %v247_v20 }
 0x10e   :  { %v375_v24 = vmax.f32 %v359_v22, 0.0 }
 0x10f   :  { %v424_v29 = vpop.permute.xlu1 %423 }
 0x110   :  { %v399_v6 = vpack.c.bf16 %v375_v24, %v374_v23 }
 0x112   :  { %873 = vmatprep.subr.bf16.mxu0 %v399_v6  ;;  %898 = vmatprep.subr.bf16.mxu1 %v399_v6 }
 0x113   :  { %874 = vmatpush3.bf16.msra.mxu0 %v399_v6  ;;  %906 = vmatpush3.bf16.msra.mxu1 %v399_v6  ;;  %v434_v31 = vpop.permute.xlu1 %433 }
 0x116   :  { %876 = vmatmul.mubr.bf16.vlgmr.msra.gmra.mrb[0].mxu0 %v930_v11  ;;  %884 = vmatmul.mubr.bf16.vlgmr.msra.gmra.mrb[0].mxu1 %v931_v12 }
 0x117   :  { %879 = vmatprep.mubr.bf16.mxu0 %v932_v25  ;;  %887 = vmatprep.mubr.bf16.mxu1 %v933_v26  ;;  %v681_v33 = vpop.permute.xlu1 %680 }
 0x11b   :  { %v686_v35 = vpop.permute.xlu1 %685 }
 0x11e   :  { %880 = vmatmul.mubr.bf16.gmra.mrb[4].mxu0 %v934_v56  ;;  %888 = vmatmul.mubr.bf16.gmra.mrb[4].mxu1 %v935_v27 }
 0x11f   :  { %v691_v37 = vpop.permute.xlu1 %690 }
 0x123   :  { %v696_v39 = vpop.permute.xlu1 %695 }
 0x127   :  { %v701_v41 = vpop.permute.xlu1 %700 }
 0x12b   :  { %v706_v59 = vpop.permute.xlu1 %705 }
 0x12f   :  { %v711_v44 = vpop.permute.xlu1 %710 }
 0x133   :  { %v716_v46 = vpop.permute.xlu1 %715 }
 0x137   :  { %v1314_v48 = vpop.permute.xlu1 %720 }
 0x13b   :  { %v726_v4 = vpop.permute.xlu1 %725 }
 0x1e9   :  { %v877_v49 = vpop.f32.mrb[0].mxu0  ;;  %v885_v50 = vpop.f32.mrb[0].mxu1 }
 0x1ea   :  { %v578_v51 = vpop.f32.mrb[1].mxu0  ;;  %v610_v52 = vpop.f32.mrb[1].mxu1  ;;  %v587_v53 = vadd.f32 %v877_v49, %v429_v30 }
 0x1eb   :  { %v579_v55 = vadd.f32 %v578_v51, %v419_v28  ;;  %v878_v57 = vpop.f32.mrb[2].mxu0  ;;  %v886_v58 = vpop.f32.mrb[2].mxu1  ;;  %v611_v12 = vadd.f32 %v610_v52, %v459_v42 }
 0x1ec   :  { %v590_v54 = vadd.f32 %v878_v57, %v434_v31  ;;  %v581_v60 = vpop.f32.mrb[3].mxu0  ;;  %v613_v61 = vpop.f32.mrb[3].mxu1  ;;  %v643_v63 = vmax.f32 %v587_v53, 0.0  ;;  %v622_v49 = vadd.f32 %v886_v58, %v474_v47 }
 0x1ed   :  { %v641_v0 = vmax.f32 %v579_v55, 0.0  ;;  %v582_v62 = vadd.f32 %v581_v60, %v424_v29  ;;  %v484_v28 = vpop.permute.xlu0 %483  ;;  %v614_v29 = vadd.f32 %v613_v61, %v464_v43 }
 0x1ee   :  { %v644_v5 = vmax.f32 %v590_v54, 0.0  ;;  %v755_v15 = vmul.f32 %v686_v35, %v643_v63  ;;  %v649_v35 = vmax.f32 %v611_v12, 0.0  ;;  %v652_v54 = vmax.f32 %v622_v49, 0.0 }
 0x1ef   :  { %v642_v1 = vmax.f32 %v582_v62, 0.0  ;;  %v753_v7 = vmul.f32 %v676_v32, %v641_v0  ;;  %v650_v51 = vmax.f32 %v614_v29, 0.0 }
 0x1f0   :  { %v756_v20 = vmul.f32 %v691_v37, %v644_v5  ;;  %v761_v52 = vmul.f32 %v716_v46, %v649_v35 }
 0x1f1   :  { %v754_v8 = vmul.f32 %v681_v33, %v642_v1  ;;  %v881_v9 = vpop.f32.mrb[4].mxu0  ;;  %v889_v10 = vpop.f32.mrb[4].mxu1  ;;  %v762_v43 = vmul.f32 %v1314_v48, %v650_v51 }
 0x1f2   :  { %v594_v13 = vpop.f32.mrb[5].mxu0  ;;  %v626_v14 = vpop.f32.mrb[5].mxu1  ;;  %v603_v17 = vadd.f32 %v881_v9, %v449_v38 }
 0x1f3   :  { %v769_v16 = vadd.f32 %v754_v8, %v753_v7  ;;  %v595_v18 = vadd.f32 %v594_v13, %v439_v34  ;;  %v882_v19 = vpop.f32.mrb[6].mxu0  ;;  %v890_v3 = vpop.f32.mrb[6].mxu1  ;;  %v619_v34 = vadd.f32 %v885_v50, %v469_v45 }
 0x1f4   :  { %v597_v21 = vpop.f32.mrb[7].mxu0  ;;  %v629_v22 = vpop.f32.mrb[7].mxu1  ;;  %v606_v6 = vadd.f32 %v882_v19, %v454_v40  ;;  %v647_v25 = vmax.f32 %v603_v17, 0.0 }
 0x1f5   :  { %v770_v23 = vadd.f32 %v769_v16, %v755_v15  ;;  %v645_v24 = vmax.f32 %v595_v18, 0.0  ;;  %v598_v11 = vadd.f32 %v597_v21, %v444_v36  ;;  %v731_v33 = vpop.permute.xlu1 %730  ;;  %v489_v36 = vpop.permute.xlu0 %488  ;;  %v651_v42 = vmax.f32 %v619_v34, 0.0 }
 0x1f6   :  { %v648_v31 = vmax.f32 %v606_v6, 0.0  ;;  %v759_v37 = vmul.f32 %v706_v59, %v647_v25  ;;  %v635_v45 = vadd.f32 %v889_v10, %v489_v36  ;;  %v764_v47 = vmul.f32 %v731_v33, %v652_v54 }
 0x1f7   :  { %v757_v26 = vmul.f32 %v696_v39, %v645_v24  ;;  %v771_v56 = vadd.f32 %v770_v23, %v756_v20  ;;  %v646_v27 = vmax.f32 %v598_v11, 0.0  ;;  %v627_v39 = vadd.f32 %v626_v14, %v479_v2 }
 0x1f8   :  { %v760_v53 = vmul.f32 %v711_v44, %v648_v31  ;;  %v763_v61 = vmul.f32 %v726_v4, %v651_v42  ;;  %v655_v1 = vmax.f32 %v635_v45, 0.0  ;;  %v796_v15 = vlaneseq }
 0x1f9   :  { %v772_v30 = vadd.f32 %v771_v56, %v757_v26  ;;  %v758_v32 = vmul.f32 %v701_v41, %v646_v27  ;;  %v736_v57 = vpop.permute.xlu1 %735  ;;  %v630_v41 = vadd.f32 %v629_v22, %v484_v28  ;;  %v653_v50 = vmax.f32 %v627_v39, 0.0  ;;  %v494_v0 = vpop.permute.xlu0 %493 }
 0x1fa   :  { %v638_v58 = vadd.f32 %v890_v3, %v494_v0  ;;  %v797_v18 = vshrl.u32 %v796_v15, 7 }
 0x1fb   :  { %v773_v38 = vadd.f32 %v772_v30, %v758_v32  ;;  %v654_v44 = vmax.f32 %v630_v41, 0.0  ;;  %v765_v46 = vmul.f32 %v736_v57, %v653_v50 }
 0x1fc   :  { %v656_v5 = vmax.f32 %v638_v58, 0.0  ;;  %v798_v20 = vsub.s32 0, %v797_v18 }
 0x1fd   :  { %v774_v40 = vadd.f32 %v773_v38, %v759_v37  ;;  %v741_v63 = vpop.permute.xlu1 %740  ;;  %v746_v9 = vpop.permute.xlu0 %745 }
 0x1fe   :  { %v766_v7 = vmul.f32 %v741_v63, %v654_v44  ;;  %v767_v48 = vmul.f32 %v746_v9, %v655_v1 }
 0x1ff   :  { %v775_v55 = vadd.f32 %v774_v40, %v760_v53 }
 0x201   :  { %v776_v60 = vadd.f32 %v775_v55, %v761_v52  ;;  %v751_v14 = vpop.permute.xlu1 %750  ;;  %v794_v22 = vpop.permute.xlu0 %793 }
 0x202   :  { %v768_v4 = vmul.f32 %v751_v14, %v656_v5  ;;  %v799_v24 = vrot.slane %v794_v22, %v798_v20 }
 0x203   :  { %v777_v59 = vadd.f32 %v776_v60, %v762_v43 }
 0x205   :  { %v778_v62 = vadd.f32 %v777_v59, %v763_v61 }
 0x207   :  { %v779_v2 = vadd.f32 %v778_v62, %v764_v47 }
 0x209   :  { %v780_v8 = vadd.f32 %v779_v2, %v765_v46 }
 0x20b   :  { %v781_v13 = vadd.f32 %v780_v8, %v766_v7 }
 0x20d   :  { %v782_v10 = vadd.f32 %v781_v13, %v767_v48 }
 0x20f   :  { %v783_v16 = vadd.f32 %v782_v10, %v768_v4 }
 0x211   :  { %v784_v17 = vrot.slane %v783_v16, 4 }
 0x213   :  { %v785_v19 = vadd.f32 %v784_v17, %v783_v16 }
 0x215   :  { %v786_v3 = vrot.slane %v785_v19, 2 }
 0x217   :  { %v787_v21 = vadd.f32 %v786_v3, %v785_v19 }
 0x219   :  { %v788_v23 = vrot.slane %v787_v21, 1 }
 0x21b   :  { %v789_v6 = vadd.f32 %v788_v23, %v787_v21 }
 0x21d   :  { %v800_v11 = vadd.f32 %v799_v24, %v789_v6 }
 0x21f   :  { %936 = vtanh.f32 %v800_v11  ;;  %v804_v12 = vand.u32 2147483647, %v800_v11  ;;  %v803_v35 = vmax.f32 %v800_v11, 0.0 }
 0x221   :  { %v805_v25 = vsub.f32 0.0, %v804_v12 }
 0x223   :  { %v806_v26 = vmul.f32 1.442695, %v805_v25 }
 0x225   :  { %938 = vpow2.f32 %v806_v26 }
 0x229   :  { %v937_v56 = vpop.eup %936 }
 0x22a   :  { %802 = vst [vmem:[#allocation3] sm:$0x1] %v937_v56 }
 0x22f   :  { %v939_v27 = vpop.eup %938 }
 0x230   :  { %v808_v28 = vadd.f32 1.0, %v939_v27  ;;  %v811_v29 = vmul.f32 -0.5, %v939_v27  ;;  %v814_v31 = vand.u32 2147483647, %v939_v27 }
 0x232   :  { %940 = vlog2.f32 %v808_v28  ;;  %v812_v30 = vadd.f32 1.0, %v811_v29  ;;  %vm815_vm0 = vcmp.lt.f32.partialorder %v814_v31, 0.0004427343 }
 0x234   :  { %v813_v34 = vmul.f32 %v939_v27, %v812_v30 }
 0x23c   :  { %v941_v32 = vpop.eup %940 }
 0x23d   :  { %v810_v33 = vmul.f32 0.6931472, %v941_v32 }
 0x23f   :  { %v816_v37 = vsel %vm815_vm0, %v813_v34, %v810_v33 }
 0x240   :  { %v817_v38 = vadd.f32 %v816_v37, %v803_v35 }
 0x242   :  { %818 = vst [vmem:[#allocation3 + $0x1] sm:$0x1] %v817_v38 }
 0x243   :  { %953 = shalt.err (!%p950_p4)
}
 0x244   :  { %s954_s24 = scalar_lea.hbm %s1336_s7, 32 }
 0x245   :  { %p955_p5 = scmp.ne.s32.totalorder %s1336_s7, %s954_s24  ;;  %p958_p6 = scmp.lt.u32.totalorder %s954_s24, %s1336_s7 }
 0x247   :  { %p960_p7 = pnand %p958_p6, %p955_p5 }
 0x249   :  { %963 = shalt.err (!%p960_p7)
}
 0x24a   :  { %828 = dma.vmem_to_hbm [thread:$0]  %s826_s20, 32, %s1336_s7, [#allocation4]  }
 0x24b   :  { %964 = dma.done.wait [#allocation4], 32  }
 0x24c   :  { %965 = vsyncadd [#allocation4], 4294967264 }
 0x24d   :  { %832 = vsyncpa [#allocation4], 1 }

</bundles_post_ra>
